<compile_context>
chip_gen: v7x
topology: tpu7x:2x2x1
jax: 0.10.0
libtpu: 0.0.40
codegen_flags: <defaults>
</compile_context>

<pallas_src>
import functools

import jax
import jax.numpy as jnp
from jax.experimental import pallas as pl
from jax.experimental.pallas import tpu as pltpu

LANE = 128


def _round_up(n, m):
    return ((n + m - 1) // m) * m


def _pad_dim(n):
    # Round big dims to 256 (full MXU width on v6e/v7x); keep 128 for small layers.
    return _round_up(n, 256) if n >= 1024 else _round_up(n, LANE)


def vae_encoder_kernel(x_ref, w1_ref, b1_ref, w2_ref, b2_ref, eps_ref, z_ref):
    # ---- linear1 (bf16 MXU matmul, f32 accumulate) + bias + ReLU, cast fused ----
    x = x_ref[...].astype(jnp.bfloat16)          # no-op if wrapper already cast
    h = jnp.dot(x, w1_ref[...], preferred_element_type=jnp.float32)
    h = jnp.maximum(h + b1_ref[...], 0.0).astype(jnp.bfloat16)   # fused relu + cast

    # ---- fused [mu | sigma] projection: single MXU pass over concatenated weights ----
    f = jnp.dot(h, w2_ref[...], preferred_element_type=jnp.float32) + b2_ref[...]

    btl_p = z_ref.shape[-1]                      # padded bottleneck width
    mu = f[:, :btl_p]
    sigma = jnp.exp(f[:, btl_p:])                # exp of raw head output, as in module

    # reparameterization: z = mu + sigma * eps   (eps ~ N(0,1), bf16 input, f32 math)
    z_ref[...] = mu + sigma * eps_ref[...].astype(jnp.float32)


def init_params(key, input_size, btl_size, step):
    """Raw (unpadded) f32 params mirroring the nn.Linear shapes.
    Weights are stored as (in, out) = transpose of PyTorch's (out, in)."""
    hidden = input_size - step * 1
    k1, k2, k3, k4, k5, k6 = jax.random.split(key, 6)
    s1 = 1.0 / jnp.sqrt(input_size)
    s2 = 1.0 / jnp.sqrt(hidden)
    w1 = jax.random.uniform(k1, (input_size, hidden), jnp.float32, -s1, s1)
    b1 = jax.random.uniform(k2, (1, hidden), jnp.float32, -s1, s1)
    wmu = jax.random.uniform(k3, (hidden, btl_size), jnp.float32, -s2, s2)
    bmu = jax.random.uniform(k4, (1, btl_size), jnp.float32, -s2, s2)
    wsig = jax.random.uniform(k5, (hidden, btl_size), jnp.float32, -s2, s2)
    bsig = jax.random.uniform(k6, (1, btl_size), jnp.float32, -s2, s2)
    return w1, b1, wmu, bmu, wsig, bsig


def pack_params(params, input_size, btl_size):
    """Zero-pad lane dims, fuse mu/sigma weights into one head, cast weights to bf16.
    Returns arrays only (padded dims are recovered from shapes, which stay static
    under jit)."""
    w1, b1, wmu, bmu, wsig, bsig = params
    hidden = w1.shape[1]
    in_p = _pad_dim(input_size)
    h_p = _pad_dim(hidden)
    btl_p = _pad_dim(btl_size)

    w1_p = jnp.zeros((in_p, h_p), jnp.float32).at[:input_size, :hidden].set(w1)
    b1_p = jnp.zeros((1, h_p), jnp.float32).at[:, :hidden].set(b1)

    w2_p = jnp.zeros((h_p, 2 * btl_p), jnp.float32)
    w2_p = w2_p.at[:hidden, :btl_size].set(wmu)
    w2_p = w2_p.at[:hidden, btl_p:btl_p + btl_size].set(wsig)
    b2_p = jnp.zeros((1, 2 * btl_p), jnp.float32)
    b2_p = b2_p.at[:, :btl_size].set(bmu)
    b2_p = b2_p.at[:, btl_p:btl_p + btl_size].set(bsig)

    return (w1_p.astype(jnp.bfloat16), b1_p, w2_p.astype(jnp.bfloat16), b2_p)


@functools.partial(jax.jit, static_argnames=("max_tb",))
def vae_encoder(x, packed, eps, max_tb=1024):
    """x: (B, input_size) f32, eps: (B, btl_size) f32/bf16 -> z: (B, btl_size) f32."""
    w1_p, b1_p, w2_p, b2_p = packed
    in_p, h_p = w1_p.shape                       # static (array shapes)
    btl_p = w2_p.shape[1] // 2
    B, in_dim = x.shape
    btl = eps.shape[1]

    # Batch tile: 8-aligned, and chosen so the batch grid has >= 2 steps whenever
    # B >= 16 (lets the "parallel" axis shard across v7x's two TensorCores).
    tb = min(max_tb, max(8, _round_up(pl.cdiv(B, 2), 8)))
    b_pad = _round_up(B, tb)

    # Skip pad/cast passes when shapes are already aligned (each one is an extra
    # HBM read+write of the whole tensor).
    if (B, in_dim) == (b_pad, in_p):
        x_p = x                                   # cast to bf16 happens in-kernel
    else:
        x_p = jnp.zeros((b_pad, in_p), jnp.bfloat16).at[:B, :in_dim].set(
            x.astype(jnp.bfloat16))

    if (B, btl) == (b_pad, btl_p):
        eps_p = eps
    else:
        eps_p = jnp.zeros((b_pad, btl_p), eps.dtype).at[:B, :btl].set(eps)

    grid = (b_pad // tb,)

    # VMEM footprint: resident weights (default double-buffered), pipelined
    # x/eps/z tiles, and the f32+bf16 hidden intermediates; clamp to [32, 96] MiB.
    weight_bytes = (w1_p.size * w1_p.dtype.itemsize + b1_p.size * 4
                    + w2_p.size * w2_p.dtype.itemsize + b2_p.size * 4)
    tile_bytes = tb * (in_p * x_p.dtype.itemsize
                       + btl_p * eps_p.dtype.itemsize + btl_p * 4)
    h_bytes = tb * h_p * (4 + 2)
    vmem_limit = int(min(96 << 20,
                         max(32 << 20,
                             2 * weight_bytes + 2 * tile_bytes + h_bytes + (8 << 20))))

    cost = pl.CostEstimate(
        flops=2 * b_pad * in_p * h_p + 2 * b_pad * h_p * (2 * btl_p),
        transcendentals=b_pad * btl_p,
        bytes_accessed=(x_p.size * x_p.dtype.itemsize
                        + eps_p.size * eps_p.dtype.itemsize
                        + b_pad * btl_p * 4 + weight_bytes),
    )

    z_p = pl.pallas_call(
        vae_encoder_kernel,
        out_shape=jax.ShapeDtypeStruct((b_pad, btl_p), jnp.float32),
        grid_spec=pltpu.PrefetchScalarGridSpec(
            num_scalar_prefetch=0,
            grid=grid,
            in_specs=[
                pl.BlockSpec((tb, in_p), lambda i: (i, 0)),        # x tile
                pl.BlockSpec((in_p, h_p), lambda i: (0, 0)),       # w1 (resident)
                pl.BlockSpec((1, h_p), lambda i: (0, 0)),          # b1 (resident)
                pl.BlockSpec((h_p, 2 * btl_p), lambda i: (0, 0)),  # fused w2 (resident)
                pl.BlockSpec((1, 2 * btl_p), lambda i: (0, 0)),    # fused b2 (resident)
                pl.BlockSpec((tb, btl_p), lambda i: (i, 0)),       # eps tile (bf16)
            ],
            out_specs=pl.BlockSpec((tb, btl_p), lambda i: (i, 0)), # z tile (lane-dense)
        ),
        compiler_params=pltpu.CompilerParams(
            dimension_semantics=("parallel",),
            vmem_limit_bytes=vmem_limit,
        ),
        cost_estimate=cost,
    )(x_p, w1_p, b1_p, w2_p, b2_p, eps_p)

    if (B, btl) == (b_pad, btl_p):
        return z_p                                 # no slicing pass when unpadded
    return z_p[:B, :btl]


if __name__ == "__main__":
    # Small, forward-consistent shapes: hidden = input_size - step = 24.
    batch = 8
    input_size = 32
    btl_size = 16
    step = 8

    key = jax.random.PRNGKey(0)
    kx, kp, ke = jax.random.split(key, 3)

    x = jax.random.normal(kx, (batch, input_size), jnp.float32)
    params = init_params(kp, input_size, btl_size, step)
    # eps supplied as bf16 (halves its HBM read); reparam math stays f32 in-kernel.
    eps = jax.random.normal(ke, (batch, btl_size), dtype=jnp.bfloat16)

    packed = pack_params(params, input_size, btl_size)
    z = vae_encoder(x, packed, eps)
    jax.block_until_ready(z)

    # Reference in plain JAX, emulating the kernel's bf16-input / f32-accumulate dots.
    w1, b1, wmu, bmu, wsig, bsig = params

    def bf(v):
        return v.astype(jnp.bfloat16).astype(jnp.float32)

    h_ref = jnp.maximum(bf(x) @ bf(w1) + b1, 0.0)
    mu_ref = bf(h_ref) @ bf(wmu) + bmu
    sig_ref = jnp.exp(bf(h_ref) @ bf(wsig) + bsig)
    z_ref = mu_ref + sig_ref * eps.astype(jnp.float32)

    assert z.shape == (batch, btl_size)
    assert jnp.all(jnp.isfinite(z)), "non-finite values in kernel output"
    assert jnp.allclose(z, z_ref, atol=2e-2, rtol=2e-2), "mismatch vs reference"

    print("KERNEL_OK")
</pallas_src>

<mosaic_0001>
module attributes {stable_mosaic.version = 11 : i64} {
  func.func @vae_encoder_kernel(%arg0: i32, %arg1: memref<8x128xbf16, #tpu.memory_space<vmem>>, %arg2: memref<128x128xbf16, #tpu.memory_space<vmem>>, %arg3: memref<1x128xf32, #tpu.memory_space<vmem>>, %arg4: memref<128x256xbf16, #tpu.memory_space<vmem>>, %arg5: memref<1x256xf32, #tpu.memory_space<vmem>>, %arg6: memref<8x128xbf16, #tpu.memory_space<vmem>>, %arg7: memref<8x128xf32, #tpu.memory_space<vmem>>) attributes {dimension_semantics = [#tpu.dimension_semantics<parallel>], iteration_bounds = array<i64: 1>, scalar_prefetch = 0 : i64, scratch_operands = 0 : i64, tpu.core_type = #tpu.core_type<tc>, window_params = [{transform_indices = @transform_0, window_bounds = array<i64: 8, 128>}, {pipeline_mode = #tpu.pipeline_mode<synchronous>, transform_indices = @transform_1, window_bounds = array<i64: 128, 128>}, {pipeline_mode = #tpu.pipeline_mode<synchronous>, transform_indices = @transform_2, window_bounds = array<i64: 1, 128>}, {pipeline_mode = #tpu.pipeline_mode<synchronous>, transform_indices = @transform_3, window_bounds = array<i64: 128, 256>}, {pipeline_mode = #tpu.pipeline_mode<synchronous>, transform_indices = @transform_4, window_bounds = array<i64: 1, 256>}, {transform_indices = @transform_5, window_bounds = array<i64: 8, 128>}, {transform_indices = @transform_6, window_bounds = array<i64: 8, 128>}]} {
    %c0 = arith.constant 0 : index
    %c0_0 = arith.constant 0 : index
    %0 = vector.load %arg1[%c0, %c0_0] : memref<8x128xbf16, #tpu.memory_space<vmem>>, vector<8x128xbf16>
    %c0_1 = arith.constant 0 : index
    %c0_2 = arith.constant 0 : index
    %1 = vector.load %arg2[%c0_1, %c0_2] : memref<128x128xbf16, #tpu.memory_space<vmem>>, vector<128x128xbf16>
    %cst = arith.constant dense<0.000000e+00> : vector<8x128xf32>
    %2 = tpu.matmul %0, %1, %cst {dimension_numbers = #tpu.dot_dimension_numbers<[1], [0], [0], [1], [0, 0, 1, 1], [], []>} : vector<8x128xbf16>, vector<128x128xbf16>, vector<8x128xf32> -> vector<8x128xf32>
    %c0_3 = arith.constant 0 : index
    %c0_4 = arith.constant 0 : index
    %3 = vector.load %arg3[%c0_3, %c0_4] : memref<1x128xf32, #tpu.memory_space<vmem>>, vector<1x128xf32>
    %4 = vector.broadcast %3 : vector<1x128xf32> to vector<8x128xf32>
    %5 = arith.addf %2, %4 : vector<8x128xf32>
    %cst_5 = arith.constant 0.000000e+00 : f32
    %6 = vector.broadcast %cst_5 : f32 to vector<8x128xf32>
    %7 = arith.maximumf %5, %6 : vector<8x128xf32>
    %8 = arith.truncf %7 : vector<8x128xf32> to vector<8x128xbf16>
    %c0_6 = arith.constant 0 : index
    %c0_7 = arith.constant 0 : index
    %9 = vector.load %arg4[%c0_6, %c0_7] : memref<128x256xbf16, #tpu.memory_space<vmem>>, vector<128x256xbf16>
    %cst_8 = arith.constant dense<0.000000e+00> : vector<8x256xf32>
    %10 = tpu.matmul %8, %9, %cst_8 {dimension_numbers = #tpu.dot_dimension_numbers<[1], [0], [0], [1], [0, 0, 1, 1], [], []>} : vector<8x128xbf16>, vector<128x256xbf16>, vector<8x256xf32> -> vector<8x256xf32>
    %c0_9 = arith.constant 0 : index
    %c0_10 = arith.constant 0 : index
    %11 = vector.load %arg5[%c0_9, %c0_10] : memref<1x256xf32, #tpu.memory_space<vmem>>, vector<1x256xf32>
    %12 = vector.broadcast %11 : vector<1x256xf32> to vector<8x256xf32>
    %13 = arith.addf %10, %12 : vector<8x256xf32>
    %14 = vector.extract_strided_slice %13 {offsets = [0, 0], sizes = [8, 128], strides = [1, 1]} : vector<8x256xf32> to vector<8x128xf32>
    %15 = vector.extract_strided_slice %13 {offsets = [0, 128], sizes = [8, 128], strides = [1, 1]} : vector<8x256xf32> to vector<8x128xf32>
    %16 = math.exp %15 : vector<8x128xf32>
    %c0_11 = arith.constant 0 : index
    %c0_12 = arith.constant 0 : index
    %17 = vector.load %arg6[%c0_11, %c0_12] : memref<8x128xbf16, #tpu.memory_space<vmem>>, vector<8x128xbf16>
    %18 = arith.extf %17 : vector<8x128xbf16> to vector<8x128xf32>
    %19 = arith.mulf %16, %18 : vector<8x128xf32>
    %20 = arith.addf %14, %19 : vector<8x128xf32>
    %c0_13 = arith.constant 0 : index
    %c0_14 = arith.constant 0 : index
    %21 = vector.load %arg7[%c0_13, %c0_14] : memref<8x128xf32, #tpu.memory_space<vmem>>, vector<8x128xf32>
    tpu.vector_store %arg7[%c0_13, %c0_14], %20 {strides = array<i32>} : memref<8x128xf32, #tpu.memory_space<vmem>>, vector<8x128xf32>,
    return
  }
  func.func @transform_0(%arg0: i32) -> (i32, i32) {
    %c0_i32 = arith.constant 0 : i32
    %c0_i32_0 = arith.constant 0 : i32
    return %arg0, %c0_i32 : i32, i32
  }
  func.func @transform_1(%arg0: i32) -> (i32, i32) {
    %c0_i32 = arith.constant 0 : i32
    %c0_i32_0 = arith.constant 0 : i32
    %c0_i32_1 = arith.constant 0 : i32
    return %c0_i32, %c0_i32_0 : i32, i32
  }
  func.func @transform_2(%arg0: i32) -> (i32, i32) {
    %c0_i32 = arith.constant 0 : i32
    %c0_i32_0 = arith.constant 0 : i32
    %c0_i32_1 = arith.constant 0 : i32
    return %c0_i32, %c0_i32_0 : i32, i32
  }
  func.func @transform_3(%arg0: i32) -> (i32, i32) {
    %c0_i32 = arith.constant 0 : i32
    %c0_i32_0 = arith.constant 0 : i32
    %c0_i32_1 = arith.constant 0 : i32
    return %c0_i32, %c0_i32_0 : i32, i32
  }
  func.func @transform_4(%arg0: i32) -> (i32, i32) {
    %c0_i32 = arith.constant 0 : i32
    %c0_i32_0 = arith.constant 0 : i32
    %c0_i32_1 = arith.constant 0 : i32
    return %c0_i32, %c0_i32_0 : i32, i32
  }
  func.func @transform_5(%arg0: i32) -> (i32, i32) {
    %c0_i32 = arith.constant 0 : i32
    %c0_i32_0 = arith.constant 0 : i32
    return %arg0, %c0_i32 : i32, i32
  }
  func.func @transform_6(%arg0: i32) -> (i32, i32) {
    %c0_i32 = arith.constant 0 : i32
    %c0_i32_0 = arith.constant 0 : i32
    return %arg0, %c0_i32 : i32, i32
  }
}

</mosaic_0001>

<bundles_post_ra>
// kernel: vae_encoder.1
= control target key start
LH: loop header
LB: loop body
LE: loop exit
PB: predicated region body
PF: predicated region fallthrough
CT: control target
= control target key end

     0   :  { %11 = vsyncpa [#allocation3], 0  ;;  %s602_s0 = inlined_call_operand.vmem [shape: bf16[8,128], index: 0, kind: input, shape index: {}]   ;;  %s603_s1 = inlined_call_operand.hbm [shape: bf16[128,128], index: 1, kind: input, shape index: {}]   ;;  %s604_s2 = inlined_call_operand.vmem [shape: f32[1,128], index: 2, kind: input, shape index: {}]   ;;  %s605_s3 = inlined_call_operand.hbm [shape: bf16[128,256], index: 3, kind: input, shape index: {}]   ;;  %s606_s4 = inlined_call_operand.vmem [shape: f32[1,256], index: 4, kind: input, shape index: {}]   ;;  %s607_s5 = inlined_call_operand.vmem [shape: bf16[8,128], index: 5, kind: input, shape index: {}]   ;;  %s608_s6 = inlined_call_operand.hbm [shape: f32[8,128], index: 6, kind: output, shape index: {}]  }
   0x1   :  { %12 = vsyncpa [#allocation6], 0 }
   0x2   :  { %13 = vsyncpa [#allocation4], 0  ;;  %s509_s21 = smov [#allocation2]   ;;  %s437_s25 = scalar_lea.hbm %s603_s1, 1024 }
   0x3   :  { %s21_s22 = sshll.u32 %s509_s21, 4  ;;  %p438_p0 = scmp.ne.s32.totalorder %s603_s1, %s437_s25  ;;  %s22_s22 = int_to_ptr.vmem [resolvable:$true] %s21_s22 }
   0x4   :  { %p441_p1 = scmp.lt.u32.totalorder %s437_s25, %s603_s1 }
   0x6   :  { %p443_p2 = pnand %p441_p1, %p438_p0 }
   0x8   :  { %446 = shalt.err (!%p443_p2)
}
   0x9   :  { %s447_s30 = scalar_lea.vmem %s22_s22, 1024  ;;  %p452_p4 = scmp.lt.s32.totalorder %s22_s22, %s22_s22 }
   0xa   :  { %p448_p3 = scmp.ne.s32.totalorder %s22_s22, %s447_s30  ;;  %p453_p5 = scmp.lt.s32.totalorder %s447_s30, %s447_s30 }
   0xc   :  { %p454_p6 = por %p453_p5, %p452_p4 }
   0xe   :  { %p455_p7 = pnand %p454_p6, %p448_p3 }
  0x10   :  { %458 = shalt.err (!%p455_p7)
}
  0x11   :  { %s510_s7 = smov 64   ;;  %s511_s8 = smov 4  }
  0x12   :  { %27 = dma.hbm_to_vmem [thread:$0]  %s603_s1, 1024, %s22_s22, [#allocation3], %s510_s7, %s510_s7, %s511_s8  }
  0x13   :  { %s512_s11 = smov [#allocation5]   ;;  %s459_s15 = scalar_lea.hbm %s605_s3, 2048 }
  0x14   :  { %s35_s12 = sshll.u32 %s512_s11, 4  ;;  %p460_p8 = scmp.ne.s32.totalorder %s605_s3, %s459_s15  ;;  %s36_s12 = int_to_ptr.vmem [resolvable:$true] %s35_s12 }
  0x15   :  { %p463_p9 = scmp.lt.u32.totalorder %s459_s15, %s605_s3 }
  0x17   :  { %p465_p10 = pnand %p463_p9, %p460_p8 }
  0x19   :  { %468 = shalt.err (!%p465_p10)
}
  0x1a   :  { %s469_s20 = scalar_lea.vmem %s36_s12, 2048  ;;  %p474_p12 = scmp.lt.s32.totalorder %s36_s12, %s36_s12 }
  0x1b   :  { %p470_p11 = scmp.ne.s32.totalorder %s36_s12, %s469_s20  ;;  %p475_p13 = scmp.lt.s32.totalorder %s469_s20, %s469_s20 }
  0x1d   :  { %p476_p0 = por %p475_p13, %p474_p12 }
  0x1f   :  { %p477_p1 = pnand %p476_p0, %p470_p11 }
  0x21   :  { %480 = shalt.err (!%p477_p1)
}
  0x22   :  { %s513_s1 = smov 128   ;;  %s514_s21 = smov 8  }
  0x23   :  { %41 = dma.hbm_to_vmem [thread:$0]  %s605_s3, 2048, %s36_s12, [#allocation6], %s513_s1, %s513_s1, %s514_s21  }
  0x24   :  { %503 = dma.done.wait [#allocation3], 1024  }
  0x25   :  { %504 = vsyncadd [#allocation3], 4294966272 }
  0x26   :  { %505 = dma.done.wait [#allocation6], 2048  }
  0x27   :  { %506 = vsyncadd [#allocation6], 4294965248  ;;  %v515_v0 = vmov 0.0   ;;  %vm516_vm0 = vmmov 0   ;;  %v403_v1 = vld [vmem:[#allocation2] sm:$0xff]   ;;  %v404_v2 = vld [vmem:[#allocation2 + $0x8] sm:$0xff]   ;;  %v185_v35 = vlaneseq }
  0x28   :  { %373 = vmatprep.subr.bf16.mxu0 %v515_v0  ;;  %389 = vmatprep.mubr.msk.bf16.mxu0 %vm516_vm0, %v515_v0  ;;  %v405_v3 = vld [vmem:[#allocation2 + $0x10] sm:$0xff]   ;;  %v411_v4 = vld [vmem:[#allocation5 + $0x4] ss:$8 sps:$4 sm:$0xff]   ;;  %v413_v5 = vld [vmem:[#allocation5] ss:$8 sps:$4 sm:$0xff]   ;;  %v517_v26 = vmov 0  }
  0x29   :  { %374 = vmatpush3.bf16.msra.mxu0 %v403_v1  ;;  %v406_v6 = vld [vmem:[#allocation2 + $0x18] sm:$0xff]   ;;  %275 = vmatprep.subr.bf16.mxu1 %v411_v4  ;;  %v417_v9 = vld [vmem:[#allocation5 + $0x24] ss:$8 sps:$4 sm:$0xff]   ;;  %v419_v11 = vld [vmem:[#allocation5 + $0x20] ss:$8 sps:$4 sm:$0xff]   ;;  %v186_v36 = vshrl.u32 %v185_v35, 7 }
  0x2a   :  { %375 = vmatprep.subr.bf16.mxu0 %v515_v0  ;;  %v414_v7 = vld [vmem:[#allocation5 + $0x14] ss:$8 sps:$4 sm:$0xff]   ;;  %276 = vmatpush1.bf16.msra.mxu1 %v413_v5  ;;  %v416_v8 = vld [vmem:[#allocation5 + $0x10] ss:$8 sps:$4 sm:$0xff]   ;;  %v407_v10 = vld [vmem:[#allocation2 + $0x20] sm:$0xff]   ;;  %s518_s29 = smov [#allocation7]  }
  0x2b   :  { %277 = vmatprep.subr.bf16.mxu1 %v414_v7  ;;  %v420_v12 = vld [vmem:[#allocation5 + $0x34] ss:$8 sps:$4 sm:$0xff]   ;;  %v408_v13 = vld [vmem:[#allocation2 + $0x28] sm:$0xff]   ;;  %v422_v14 = vld [vmem:[#allocation5 + $0x30] ss:$8 sps:$4 sm:$0xff]   ;;  %307 = vmatprep.mubr.bf16.mxu1 %v517_v26  ;;  %v191_v37 = vsub.s32 1, %v186_v36 }
  0x2c   :  { %v423_v15 = vld [vmem:[#allocation5 + $0x44] ss:$8 sps:$4 sm:$0xff]   ;;  %v409_v16 = vld [vmem:[#allocation2 + $0x30] sm:$0xff]   ;;  %v425_v17 = vld [vmem:[#allocation5 + $0x40] ss:$8 sps:$4 sm:$0xff]   ;;  %v187_v46 = vsub.s32 0, %v186_v36 }
  0x2d   :  { %376 = vmatpush3.bf16.msra.mxu0 %v404_v2  ;;  %v426_v18 = vld [vmem:[#allocation5 + $0x54] ss:$8 sps:$4 sm:$0xff]   ;;  %v428_v20 = vld [vmem:[#allocation5 + $0x50] ss:$8 sps:$4 sm:$0xff]   ;;  %v429_v21 = vld [vmem:[#allocation5 + $0x64] ss:$8 sps:$4 sm:$0xff]  }
  0x2e   :  { %377 = vmatprep.subr.bf16.mxu0 %v515_v0  ;;  %278 = vmatpush1.bf16.msra.mxu1 %v416_v8  ;;  %v410_v19 = vld [vmem:[#allocation2 + $0x38] sm:$0xff]   ;;  %v53_v22 = vld [vmem:[%s602_s0] sm:$0xf]  ;;  %s329_s30 = sshll.u32 %s518_s29, 4  ;;  %s330_s30 = int_to_ptr.vmem [resolvable:$true] %s329_s30 }
  0x2f   :  { %279 = vmatprep.subr.bf16.mxu1 %v417_v9  ;;  %v431_v23 = vld [vmem:[#allocation5 + $0x60] ss:$8 sps:$4 sm:$0xff]   ;;  %v432_v24 = vld [vmem:[#allocation5 + $0x74] ss:$8 sps:$4 sm:$0xff]   ;;  %v434_v25 = vld [vmem:[#allocation5 + $0x70] ss:$8 sps:$4 sm:$0xff]   ;;  %p486_p3 = scmp.lt.s32.totalorder %s330_s30, %s330_s30 }
  0x30   :  { %v339_v27 = vld [vmem:[%s604_s2] ss:$0 sm:$0xff] }
  0x31   :  { %378 = vmatpush3.bf16.msra.mxu0 %v405_v3  ;;  %v183_v38 = vld [vmem:[%s606_s4] sm:$0x3]  ;;  %s481_s4 = scalar_lea.vmem %s330_s30, 128 }
  0x32   :  { %379 = vmatprep.subr.bf16.mxu0 %v515_v0  ;;  %280 = vmatpush1.bf16.msra.mxu1 %v419_v11  ;;  %v192_v39 = vrot.slane %v183_v38, %v191_v37  ;;  %v318_v47 = vld [vmem:[%s607_s5] sm:$0xf]  ;;  %v188_v48 = vrot.slane %v183_v38, %v187_v46  ;;  %p482_p2 = scmp.ne.s32.totalorder %s330_s30, %s481_s4  ;;  %p487_p4 = scmp.lt.s32.totalorder %s481_s4, %s481_s4 }
  0x33   :  { %281 = vmatprep.subr.bf16.mxu1 %v420_v12  ;;  %v319_v49 = vunpack.c.l.bf16 %v318_v47 }
  0x34   :  { %p488_p5 = por %p487_p4, %p486_p3 }
  0x35   :  { %380 = vmatpush3.bf16.msra.mxu0 %v406_v6 }
  0x36   :  { %381 = vmatprep.subr.bf16.mxu0 %v515_v0  ;;  %282 = vmatpush1.bf16.msra.mxu1 %v422_v14  ;;  %p489_p6 = pnand %p488_p5, %p482_p2 }
  0x37   :  { %283 = vmatprep.subr.bf16.mxu1 %v423_v15 }
  0x39   :  { %382 = vmatpush3.bf16.msra.mxu0 %v407_v10 }
  0x3a   :  { %383 = vmatprep.subr.bf16.mxu0 %v515_v0  ;;  %284 = vmatpush1.bf16.msra.mxu1 %v425_v17 }
  0x3b   :  { %285 = vmatprep.subr.bf16.mxu1 %v426_v18 }
  0x3d   :  { %384 = vmatpush3.bf16.msra.mxu0 %v408_v13 }
  0x3e   :  { %385 = vmatprep.subr.bf16.mxu0 %v515_v0  ;;  %286 = vmatpush1.bf16.msra.mxu1 %v428_v20 }
  0x3f   :  { %287 = vmatprep.subr.bf16.mxu1 %v429_v21 }
  0x41   :  { %386 = vmatpush3.bf16.msra.mxu0 %v409_v16 }
  0x42   :  { %387 = vmatprep.subr.bf16.mxu0 %v515_v0  ;;  %288 = vmatpush1.bf16.msra.mxu1 %v431_v23 }
  0x43   :  { %289 = vmatprep.subr.bf16.mxu1 %v432_v24 }
  0x45   :  { %388 = vmatpush3.bf16.msra.mxu0 %v410_v19 }
  0x46   :  { %290 = vmatpush1.bf16.msra.mxu1 %v434_v25 }
  0x48   :  { %390 = vmatmul.mubr.bf16.vlgmr.msra.gmra.mrb[0].mxu0 %v53_v22 }
 0x11b   :  { %v159_v28 = vpop.f32.mrb[0].mxu0 }
 0x11c   :  { %v160_v29 = vadd.f32 %v339_v27, %v159_v28  ;;  %v391_v30 = vpop.f32.mrb[1].mxu0 }
 0x11d   :  { %v162_v31 = vpop.f32.mrb[2].mxu0 }
 0x11e   :  { %v165_v32 = vmax.f32 %v160_v29, 0.0  ;;  %v392_v33 = vpop.f32.mrb[3].mxu0 }
 0x120   :  { %v166_v34 = vpack.c.bf16 %v165_v32, %v165_v32 }
 0x122   :  { %308 = vmatmul.mubr.bf16.vlgmr.msra.gmra.mrb[0].mxu1 %v166_v34 }
 0x1f5   :  { %v309_v40 = vpop.f32.mrb[0].mxu1 }
 0x1f6   :  { %v311_v41 = vpop.f32.mrb[1].mxu1  ;;  %v310_v51 = vadd.f32 %v309_v40, %v188_v48 }
 0x1f7   :  { %v312_v42 = vadd.f32 %v311_v41, %v192_v39  ;;  %v313_v43 = vpop.f32.mrb[2].mxu1 }
 0x1f8   :  { %v314_v44 = vpop.f32.mrb[3].mxu1 }
 0x1f9   :  { %v316_v45 = vmul.f32 1.442695, %v312_v42 }
 0x1fb   :  { %435 = vpow2.f32 %v316_v45 }
 0x205   :  { %v436_v50 = vpop.eup %435 }
 0x206   :  { %v320_v52 = vmul.f32 %v436_v50, %v319_v49 }
 0x208   :  { %v321_v53 = vadd.f32 %v320_v52, %v310_v51 }
 0x20a   :  { %322 = vst [vmem:[#allocation7] sm:$0xff] %v321_v53 }
 0x20b   :  { %492 = shalt.err (!%p489_p6)
}
 0x20c   :  { %s493_s5 = scalar_lea.hbm %s608_s6, 128 }
 0x20d   :  { %p494_p7 = scmp.ne.s32.totalorder %s608_s6, %s493_s5  ;;  %p497_p8 = scmp.lt.u32.totalorder %s493_s5, %s608_s6 }
 0x20f   :  { %p499_p9 = pnand %p497_p8, %p494_p7 }
 0x211   :  { %502 = shalt.err (!%p499_p9)
}
 0x212   :  { %332 = dma.vmem_to_hbm [thread:$0]  %s330_s30, 128, %s608_s6, [#allocation4]  }
 0x213   :  { %507 = dma.done.wait [#allocation4], 128  }
 0x214   :  { %508 = vsyncadd [#allocation4], 4294967168 }
 0x215   :  { %336 = vsyncpa [#allocation3], 1 }
 0x216   :  { %337 = vsyncpa [#allocation6], 1 }
 0x217   :  { %338 = vsyncpa [#allocation4], 1 }

</bundles_post_ra>
